<compile_context>
chip_gen: v5e
topology: v5e:2x2
jax: 0.10.0
libtpu: 0.0.40
codegen_flags: <defaults>
</compile_context>

<pallas_src>
import math

import jax
import jax.numpy as jnp
from jax.experimental import pallas as pl
from jax.experimental.pallas import tpu as pltpu


# ----------------------------------------------------------------------------
# Path 1: zero-copy (caller donates x, e.g. jax.jit(..., donate_argnums=0)).
# ----------------------------------------------------------------------------
def _alias_noop_kernel(x_hbm, o_hbm):
    # The output buffer is aliased to the (donated) input buffer and already
    # holds the correct bits: a row-major reshape moves no data, so there is
    # nothing to do.  The aliased output being returned keeps the call live
    # (has_side_effects=True below additionally pins it against DCE/CSE).
    del x_hbm, o_hbm


def _alias_noop(x: jax.Array) -> jax.Array:
    B, D = x.shape
    return pl.pallas_call(
        _alias_noop_kernel,
        out_shape=jax.ShapeDtypeStruct((B, D), x.dtype),
        in_specs=[pl.BlockSpec(memory_space=pl.ANY)],
        out_specs=pl.BlockSpec(memory_space=pl.ANY),
        # Output reuses the input HBM buffer when the caller donates it.
        # (If the caller does NOT donate, XLA inserts one defensive copy and
        # the result is still correct — but then prefer donate=False below.)
        input_output_aliases={0: 0},
        cost_estimate=pl.CostEstimate(flops=0, transcendentals=0, bytes_accessed=0),
        compiler_params=pltpu.CompilerParams(has_side_effects=True),
    )(x)


# ----------------------------------------------------------------------------
# Path 2: streaming HBM->HBM DMA copy (no donation assumed, no alias).
# ----------------------------------------------------------------------------
def _num_row_chunks(B: int, row_bytes: int, target_chunk_bytes: int = 8 * 1024 * 1024) -> int:
    """Number of equally-sized, fully-contiguous row chunks for the copy.

    Full rows stay contiguous (one DMA descriptor per chunk).  The chunk count
    targets ~8 MiB per DMA, always divides B (so every chunk has the same
    static size), and is >= 2 for non-trivial inputs so two DMAs stay in
    flight (and both of v7x's TensorCores / multiple DMA engines have work).
    """
    total = B * row_bytes
    want = max(1, min(B, -(-total // target_chunk_bytes)))
    if B > 1 and total > (1 << 20):
        want = max(want, 2)
    n = max(1, min(B, want))
    while B % n != 0:  # keep every chunk the same (static) size
        n -= 1
    return max(n, 1)


def _make_dma_copy_kernel(rows_per_chunk: int, n_chunks: int):
    def kernel(x_hbm, o_hbm, sem):
        s = pl.program_id(0)

        def chunk_copy(idx, slot):
            start = idx * rows_per_chunk
            return pltpu.make_async_copy(
                x_hbm.at[pl.ds(start, rows_per_chunk), :],
                o_hbm.at[pl.ds(start, rows_per_chunk), :],
                sem.at[slot],
            )

        # Prime the pipeline on the first step.
        @pl.when(s == 0)
        def _():
            chunk_copy(s, 0).start()

        # Keep two DMAs in flight: start chunk s+1 before waiting on chunk s.
        @pl.when(s + 1 < n_chunks)
        def _():
            chunk_copy(s + 1, (s + 1) & 1).start()

        # Wait for this step's chunk (same descriptor => same byte count).
        chunk_copy(s, s & 1).wait()

    return kernel


def _dma_copy(x: jax.Array) -> jax.Array:
    B, D = x.shape
    itemsize = jnp.dtype(x.dtype).itemsize
    n_chunks = _num_row_chunks(B, D * itemsize)
    rows_per_chunk = B // n_chunks

    return pl.pallas_call(
        _make_dma_copy_kernel(rows_per_chunk, n_chunks),
        out_shape=jax.ShapeDtypeStruct((B, D), x.dtype),
        grid_spec=pltpu.PrefetchScalarGridSpec(
            num_scalar_prefetch=0,
            grid=(n_chunks,),
            in_specs=[pl.BlockSpec(memory_space=pl.ANY)],
            out_specs=pl.BlockSpec(memory_space=pl.ANY),
            scratch_shapes=[pltpu.SemaphoreType.DMA((2,))],
        ),
        # Pure memory traffic: zero flops, one HBM read + one HBM write.
        cost_estimate=pl.CostEstimate(
            flops=0, transcendentals=0, bytes_accessed=2 * B * D * itemsize
        ),
        # Steps coordinate via the cross-step DMA prefetch, so the axis is
        # "arbitrary"; the copy is DMA-engine-bound, not TensorCore-bound.
        compiler_params=pltpu.CompilerParams(
            dimension_semantics=("arbitrary",),
        ),
    )(x)


# ----------------------------------------------------------------------------
# Public wrapper — matches UnFlatten(num_channels).forward(x).
# ----------------------------------------------------------------------------
def unflatten(x: jax.Array, num_channels: int, *, donate: bool = False) -> jax.Array:
    """Pallas equivalent of UnFlatten(num_channels).forward(x).

    x: (B, D) with D = num_channels * N * N for integer N.
    returns: (B, num_channels, N, N), bit-exact vs torch .view.

    donate=True selects the zero-copy aliased path; the caller MUST actually
    donate x (e.g. jax.jit(..., donate_argnums=0)), otherwise XLA inserts a
    defensive copy (still correct, just not free).  donate=False (default)
    uses the streaming HBM->HBM DMA copy with no alias.
    """
    B, D = x.shape
    N = math.isqrt(D // num_channels)  # exact integer sqrt (no FP rounding)
    assert num_channels * N * N == D, "D must equal num_channels * N * N"

    flat = _alias_noop(x) if donate else _dma_copy(x)

    # Metadata-only row-major reshape (matches torch.Tensor.view exactly).
    return flat.reshape(B, num_channels, N, N)


if __name__ == "__main__":
    key = jax.random.PRNGKey(0)
    B, C, N = 2, 4, 16          # input feature dim D = C * N * N = 1024
    D = C * N * N

    x = jax.random.normal(key, (B, D), dtype=jnp.float32)
    expected = x.reshape(B, C, N, N)

    # Fallback path: streaming HBM->HBM DMA copy (no donation required).
    out_copy = jax.block_until_ready(unflatten(x, num_channels=C))
    assert out_copy.shape == (B, C, N, N)
    assert out_copy.dtype == x.dtype
    assert bool(jnp.array_equal(out_copy, expected))

    # Primary path: zero-copy via alias + donation under jit.
    zero_copy_fn = jax.jit(
        lambda y: unflatten(y, num_channels=C, donate=True), donate_argnums=0
    )
    out_alias = jax.block_until_ready(zero_copy_fn(jnp.copy(x)))
    assert out_alias.shape == (B, C, N, N)
    assert out_alias.dtype == x.dtype
    assert bool(jnp.array_equal(out_alias, expected))

    print("KERNEL_OK")
</pallas_src>

<mosaic_0001>
module attributes {stable_mosaic.version = 11 : i64} {
  func.func @kernel(%arg0: i32, %arg1: memref<2x1024xf32, #tpu.memory_space<any>>, %arg2: memref<2x1024xf32, #tpu.memory_space<any>>, %arg3: memref<2x!tpu.dma_semaphore, #tpu.memory_space<semaphore_mem>>) attributes {dimension_semantics = [#tpu.dimension_semantics<arbitrary>], iteration_bounds = array<i64: 1>, scalar_prefetch = 0 : i64, scratch_operands = 1 : i64, tpu.core_type = #tpu.core_type<tc>, window_params = [{}, {}]} {
    %c0_i32 = arith.constant 0 : i32
    %0 = arith.cmpi eq, %arg0, %c0_i32 : i32
    %1 = arith.extui %0 : i1 to i32
    %c0_i32_0 = arith.constant 0 : i32
    %2 = arith.cmpi ne, %1, %c0_i32_0 : i32
    scf.if %2 {
      %c2_i32_6 = arith.constant 2 : i32
      %13 = arith.muli %arg0, %c2_i32_6 : i32
      %c0_i32_7 = arith.constant 0 : i32
      %c0_i32_8 = arith.constant 0 : i32
      %14 = tpu.memref_slice %arg1[%13, %c0_i32_8] : memref<2x1024xf32, #tpu.memory_space<any>> -> memref<2x1024xf32, #tpu.memory_space<any>>
      %c0_i32_9 = arith.constant 0 : i32
      %15 = tpu.memref_slice %arg2[%13, %c0_i32_9] : memref<2x1024xf32, #tpu.memory_space<any>> -> memref<2x1024xf32, #tpu.memory_space<any>>
      %16 = tpu.memref_slice %arg3[%c0_i32_7] : memref<2x!tpu.dma_semaphore, #tpu.memory_space<semaphore_mem>> -> memref<1x!tpu.dma_semaphore, #tpu.memory_space<semaphore_mem>>
      %17 = tpu.memref_squeeze %16 : memref<1x!tpu.dma_semaphore, #tpu.memory_space<semaphore_mem>> -> memref<!tpu.dma_semaphore, #tpu.memory_space<semaphore_mem>>
      tpu.enqueue_dma source(%14 : memref<2x1024xf32, #tpu.memory_space<any>>) target(%15 : memref<2x1024xf32, #tpu.memory_space<any>>) target_semaphore(%17 : memref<!tpu.dma_semaphore, #tpu.memory_space<semaphore_mem>>)
    } else {
    }
    %c1_i32 = arith.constant 1 : i32
    %3 = arith.addi %arg0, %c1_i32 : i32
    %c1_i32_1 = arith.constant 1 : i32
    %4 = arith.cmpi slt, %3, %c1_i32_1 : i32
    %5 = arith.extui %4 : i1 to i32
    %c0_i32_2 = arith.constant 0 : i32
    %6 = arith.cmpi ne, %5, %c0_i32_2 : i32
    scf.if %6 {
      %c1_i32_6 = arith.constant 1 : i32
      %13 = arith.addi %arg0, %c1_i32_6 : i32
      %c1_i32_7 = arith.constant 1 : i32
      %14 = arith.addi %arg0, %c1_i32_7 : i32
      %c1_i32_8 = arith.constant 1 : i32
      %15 = arith.andi %14, %c1_i32_8 : i32
      %c2_i32_9 = arith.constant 2 : i32
      %16 = arith.muli %13, %c2_i32_9 : i32
      %c0_i32_10 = arith.constant 0 : i32
      %17 = tpu.memref_slice %arg1[%16, %c0_i32_10] : memref<2x1024xf32, #tpu.memory_space<any>> -> memref<2x1024xf32, #tpu.memory_space<any>>
      %c0_i32_11 = arith.constant 0 : i32
      %18 = tpu.memref_slice %arg2[%16, %c0_i32_11] : memref<2x1024xf32, #tpu.memory_space<any>> -> memref<2x1024xf32, #tpu.memory_space<any>>
      %19 = tpu.memref_slice %arg3[%15] : memref<2x!tpu.dma_semaphore, #tpu.memory_space<semaphore_mem>> -> memref<1x!tpu.dma_semaphore, #tpu.memory_space<semaphore_mem>>
      %20 = tpu.memref_squeeze %19 : memref<1x!tpu.dma_semaphore, #tpu.memory_space<semaphore_mem>> -> memref<!tpu.dma_semaphore, #tpu.memory_space<semaphore_mem>>
      tpu.enqueue_dma source(%17 : memref<2x1024xf32, #tpu.memory_space<any>>) target(%18 : memref<2x1024xf32, #tpu.memory_space<any>>) target_semaphore(%20 : memref<!tpu.dma_semaphore, #tpu.memory_space<semaphore_mem>>)
    } else {
    }
    %c1_i32_3 = arith.constant 1 : i32
    %7 = arith.andi %arg0, %c1_i32_3 : i32
    %c2_i32 = arith.constant 2 : i32
    %8 = arith.muli %arg0, %c2_i32 : i32
    %c0_i32_4 = arith.constant 0 : i32
    %9 = tpu.memref_slice %arg1[%8, %c0_i32_4] : memref<2x1024xf32, #tpu.memory_space<any>> -> memref<2x1024xf32, #tpu.memory_space<any>>
    %c0_i32_5 = arith.constant 0 : i32
    %10 = tpu.memref_slice %arg2[%8, %c0_i32_5] : memref<2x1024xf32, #tpu.memory_space<any>> -> memref<2x1024xf32, #tpu.memory_space<any>>
    %11 = tpu.memref_slice %arg3[%7] : memref<2x!tpu.dma_semaphore, #tpu.memory_space<semaphore_mem>> -> memref<1x!tpu.dma_semaphore, #tpu.memory_space<semaphore_mem>>
    %12 = tpu.memref_squeeze %11 : memref<1x!tpu.dma_semaphore, #tpu.memory_space<semaphore_mem>> -> memref<!tpu.dma_semaphore, #tpu.memory_space<semaphore_mem>>
    tpu.wait_dma2 semaphore(%12 : memref<!tpu.dma_semaphore, #tpu.memory_space<semaphore_mem>>) src(%9 : memref<2x1024xf32, #tpu.memory_space<any>>) dst(%10 : memref<2x1024xf32, #tpu.memory_space<any>>)
    return
  }
}

</mosaic_0001>

<bundles_post_ra>
// kernel: tpu_custom_call.1
= control target key start
LH: loop header
LB: loop body
LE: loop exit
PB: predicated region body
PF: predicated region fallthrough
CT: control target
= control target key end

     0   :  { %s91_s12 = smov [#allocation2]   ;;  %s92_s13 = smov [#allocation3]   ;;  %s110_s0 = inlined_call_operand.hbm [shape: f32[2,1024], index: 0, kind: input, shape index: {}]   ;;  %s111_s1 = inlined_call_operand.hbm [shape: f32[2,1024], index: 1, kind: output, shape index: {}]  }
   0x1   :  { %s22_s8 = sshll.u32 %s110_s0, 4  ;;  %s24_s11 = sshll.u32 %s111_s1, 4  ;;  %s23_s8 = int_to_ptr.hbm [resolvable:$true] %s22_s8  ;;  %s25_s11 = int_to_ptr.hbm [resolvable:$true] %s24_s11 }
   0x2   :  { %s93_s14 = smov 0  }
   0x3   :  { %28 = dma.general %s23_s8, 256, %s25_s11, %s91_s12, %s92_s13, [#allocation4], %s93_s14, 0  }
   0x4   :  { %89 = dma.done.wait [#allocation2], 256 }
   0x5   :  { %90 = vsyncadd [#allocation2], 4294967040 }
   0x6   :  { %61 = vsyncmov [#allocation2] }
   0x9   :  { %s62_s15 = vpop.sfrf %61 }
   0xa   :  { %p84_p0 = scmp.ne.s32.totalorder %s62_s15, 0 }
   0xc   :  { %66 = shalt.err (%p84_p0)  }
   0xd   :  { %68 = vsyncmov [#allocation2 + $0x1] }
  0x10   :  { %s69_s16 = vpop.sfrf %68 }
  0x11   :  { %p85_p1 = scmp.ne.s32.totalorder %s69_s16, 0 }
  0x13   :  { %73 = shalt.err (%p85_p1)  }

</bundles_post_ra>
